<compile_context>
chip_gen: v7x
topology: tpu7x:2x2x1
jax: 0.10.0
libtpu: 0.0.40
codegen_flags: <defaults>
</compile_context>

<pallas_src>
import jax
import jax.numpy as jnp
import numpy as np
from jax import lax
from jax.experimental import pallas as pl
from jax.experimental.pallas import tpu as pltpu

KSIZE = 3  # the torch module's pad(2,0,2,0) only restores shape for kernel_size=3


def _gaussian_taps_1d(ksize: int, sigma: float):
    """Normalized 1D gaussian taps as static Python floats.

    GaussianSmoothing builds outer(a*g, a*g)/sum(...) == outer(g/sum(g), g/sum(g)), so the
    2D kernel is exactly separable in the normalized 1D taps.
    """
    coords = np.arange(ksize, dtype=np.float64)
    mean = (ksize - 1) / 2.0
    g = np.exp(-(((coords - mean) / sigma) ** 2) / 2.0)
    g = g / g.sum()
    return tuple(float(v) for v in g)


def _vmem_capacity_bytes() -> int:
    """Per-core VMEM capacity (generation-aware), with a conservative fallback."""
    try:
        info = pltpu.get_tpu_info()
        cap = int(getattr(info, "vmem_capacity_bytes", 0) or 0)
        if cap > 0:
            return cap
    except Exception:
        pass
    return 64 * 1024 * 1024  # v7x per-core VMEM; safe lower bound for all generations


def _make_smooth_kernel(H: int, W: int, C2: int, taps):
    """Kernel over tiles of shape (TN, L) with L = H*W*C2 flattened into the lane axis."""
    g0, g1, g2 = (float(v) for v in taps)
    WC = W * C2   # lane stride of one image row
    SW = C2       # lane stride of one image column

    def kernel(x_ref, o_ref):
        x = x_ref[...]                        # (TN, H*W*C2), input dtype
        f32 = jnp.float32

        # Separable 3x3 gaussian with f32 accumulation.  The shifts look *backwards* so
        # that lane p of the result already carries the (row-2, col-2) alignment of the
        # reflect-padded output:
        #   v[p] = sum_i g_i * x[p + (i-2)*WC]               (vertical / row pass)
        v = (g2 * x.astype(f32)
             + g1 * jnp.roll(x, WC, axis=1).astype(f32)
             + g0 * jnp.roll(x, 2 * WC, axis=1).astype(f32))
        #   a[p] = sum_{i,j} g_i g_j * x[p + (i-2)*WC + (j-2)*SW]
        #        == conv(h-2, w-2) for lane p <-> (h, w) with h >= 2, w >= 2.
        a = g2 * v + g1 * jnp.roll(v, SW, axis=1) + g0 * jnp.roll(v, 2 * SW, axis=1)

        # Reflected columns of F.pad((2,0),'reflect') on W:
        #   padded col 0 <- conv col 2  (== body value 4 columns to the right)
        #   padded col 1 <- conv col 1  (== body value 2 columns to the right)
        b0 = jnp.roll(a, -4 * SW, axis=1)
        b1 = jnp.roll(a, -2 * SW, axis=1)

        lane = lax.broadcasted_iota(jnp.int32, a.shape, 1)
        col = lane % WC                        # lane offset inside one image row
        padded = jnp.where(col < SW, b0, jnp.where(col < 2 * SW, b1, a))
        padded = padded.astype(o_ref.dtype)

        # Rows >= 2 of `padded` are final: one full-width, lane-dense, offset-0 store.
        o_ref[...] = padded

        # Reflected rows on H: padded row 0 <- conv row 2 == padded row 4,
        # padded row 1 <- conv row 1 == padded row 3 (reflected cols already in place).
        top = jnp.concatenate(
            [padded[:, 4 * WC:5 * WC], padded[:, 3 * WC:4 * WC]], axis=1)
        o_ref[:, 0:2 * WC] = top

    return kernel


def gaussian_and_resizing(x: jnp.ndarray, sigma: float = 1.0) -> jnp.ndarray:
    """x: [B, C1, H, W, C2] -> same shape/dtype (gaussian smooth + reflect pad)."""
    B, C1, H, W, C2 = x.shape
    if H < 5 or W < 5:
        raise ValueError("reflect pad (2,0,2,0) after a VALID 3x3 conv needs H >= 5 and W >= 5")

    N = B * C1
    L = H * W * C2

    # Free reshape (no HBM transpose); full flattened plane lands on the lane axis.
    planes = x.reshape(N, L)

    taps = _gaussian_taps_1d(KSIZE, sigma)

    itemsize = jnp.dtype(x.dtype).itemsize
    plane_bytes = L * itemsize

    # Generation-aware VMEM budget (v7x: 64 MiB physical, v5e/v6e: 128 MiB).
    cap = _vmem_capacity_bytes()
    budget = min(cap // 2, 64 * 1024 * 1024)

    # Per-plane working set: in+out double buffers plus ~8 f32-sized in-kernel temporaries.
    work_per_plane = L * (4 * itemsize + 8 * 4)

    tn_vmem = max(1, budget // work_per_plane)
    tn_tile = max(1, (2 * 1024 * 1024) // plane_bytes)   # ~2 MiB input tiles
    tn_steps = pl.cdiv(N, 8)                             # >= 8 grid steps when N allows
    tn = min(N, tn_vmem, tn_tile, tn_steps)
    if tn < N:
        # Block's second-minor dim must be a multiple of 8 (or span the whole axis).
        tn = min(N, max(8, (tn // 8) * 8))
    grid_n = pl.cdiv(N, tn)

    # TODO(synk): very large planes (>~4 MiB each) should switch to an H-tiled path with a
    # 2-row halo instead of whole-plane blocks; not needed at these shapes.
    est = tn * work_per_plane
    vmem_limit = int(min(max(32 * 1024 * 1024, 2 * est), (cap * 7) // 8))

    out_planes = pl.pallas_call(
        _make_smooth_kernel(H, W, C2, taps),
        out_shape=jax.ShapeDtypeStruct((N, L), x.dtype),
        grid=(grid_n,),
        in_specs=[pl.BlockSpec((tn, L), lambda i: (i, 0))],
        out_specs=pl.BlockSpec((tn, L), lambda i: (i, 0)),
        compiler_params=pltpu.CompilerParams(
            dimension_semantics=("parallel",),
            vmem_limit_bytes=vmem_limit,
        ),
    )(planes)

    # Free reshape back.
    return out_planes.reshape(B, C1, H, W, C2)


def _reference(x: jnp.ndarray, sigma: float = 1.0) -> jnp.ndarray:
    """Pure-JAX reference (lax conv + jnp reflect pad) mirroring the torch module."""
    B, C1, H, W, C2 = x.shape
    taps = jnp.asarray(_gaussian_taps_1d(KSIZE, sigma), dtype=jnp.float32)
    k2 = jnp.outer(taps, taps)[None, None]  # (1,1,3,3) == torch's normalized kernel
    planes = (jnp.transpose(x, (0, 1, 4, 2, 3))
              .reshape(B * C1 * C2, 1, H, W).astype(jnp.float32))
    y = jax.lax.conv_general_dilated(planes, k2, (1, 1), "VALID")[:, 0]
    y = jnp.pad(y, ((0, 0), (2, 0), (2, 0)), mode="reflect")
    y = jnp.transpose(y.reshape(B, C1, C2, H, W), (0, 1, 3, 4, 2))
    return y.astype(x.dtype)


if __name__ == "__main__":
    B, C1, H, W, C2 = 2, 4, 16, 16, 2   # channels = C1*C2 = 8, kernel_size=3, sigma=1.0
    sigma = 1.0

    key = jax.random.PRNGKey(0)
    x = jax.random.normal(key, (B, C1, H, W, C2), dtype=jnp.float32)

    out = jax.block_until_ready(gaussian_and_resizing(x, sigma=sigma))
    ref = jax.block_until_ready(_reference(x, sigma=sigma))

    np.testing.assert_allclose(np.asarray(out), np.asarray(ref), rtol=1e-5, atol=1e-5)
    assert out.shape == (B, C1, H, W, C2)
    assert out.dtype == x.dtype

    print("KERNEL_OK")
</pallas_src>

<mosaic_0001>
module attributes {stable_mosaic.version = 11 : i64} {
  func.func @kernel(%arg0: i32, %arg1: memref<8x512xf32, #tpu.memory_space<vmem>>, %arg2: memref<8x512xf32, #tpu.memory_space<vmem>>) attributes {dimension_semantics = [#tpu.dimension_semantics<parallel>], iteration_bounds = array<i64: 1>, scalar_prefetch = 0 : i64, scratch_operands = 0 : i64, tpu.core_type = #tpu.core_type<tc>, window_params = [{transform_indices = @transform_0, window_bounds = array<i64: 8, 512>}, {transform_indices = @transform_1, window_bounds = array<i64: 8, 512>}]} {
    %c0 = arith.constant 0 : index
    %c0_0 = arith.constant 0 : index
    %0 = vector.load %arg1[%c0, %c0_0] : memref<8x512xf32, #tpu.memory_space<vmem>>, vector<8x512xf32>
    %cst = arith.constant 0.274068624 : f32
    %1 = vector.broadcast %cst : f32 to vector<8x512xf32>
    %2 = arith.mulf %1, %0 : vector<8x512xf32>
    %3 = vector.extract_strided_slice %0 {offsets = [0, 480], sizes = [8, 32], strides = [1, 1]} : vector<8x512xf32> to vector<8x32xf32>
    %4 = vector.extract_strided_slice %0 {offsets = [0, 0], sizes = [8, 480], strides = [1, 1]} : vector<8x512xf32> to vector<8x480xf32>
    %5 = tpu.concatenate %3, %4 in 1 : vector<8x32xf32>, vector<8x480xf32> -> vector<8x512xf32>
    %cst_1 = arith.constant 0.451862752 : f32
    %6 = vector.broadcast %cst_1 : f32 to vector<8x512xf32>
    %7 = arith.mulf %6, %5 : vector<8x512xf32>
    %8 = arith.addf %2, %7 : vector<8x512xf32>
    %9 = vector.extract_strided_slice %0 {offsets = [0, 448], sizes = [8, 64], strides = [1, 1]} : vector<8x512xf32> to vector<8x64xf32>
    %10 = vector.extract_strided_slice %0 {offsets = [0, 0], sizes = [8, 448], strides = [1, 1]} : vector<8x512xf32> to vector<8x448xf32>
    %11 = tpu.concatenate %9, %10 in 1 : vector<8x64xf32>, vector<8x448xf32> -> vector<8x512xf32>
    %cst_2 = arith.constant 0.274068624 : f32
    %12 = vector.broadcast %cst_2 : f32 to vector<8x512xf32>
    %13 = arith.mulf %12, %11 : vector<8x512xf32>
    %14 = arith.addf %8, %13 : vector<8x512xf32>
    %cst_3 = arith.constant 0.274068624 : f32
    %15 = vector.broadcast %cst_3 : f32 to vector<8x512xf32>
    %16 = arith.mulf %15, %14 : vector<8x512xf32>
    %17 = vector.extract_strided_slice %14 {offsets = [0, 510], sizes = [8, 2], strides = [1, 1]} : vector<8x512xf32> to vector<8x2xf32>
    %18 = vector.extract_strided_slice %14 {offsets = [0, 0], sizes = [8, 510], strides = [1, 1]} : vector<8x512xf32> to vector<8x510xf32>
    %19 = tpu.concatenate %17, %18 in 1 : vector<8x2xf32>, vector<8x510xf32> -> vector<8x512xf32>
    %cst_4 = arith.constant 0.451862752 : f32
    %20 = vector.broadcast %cst_4 : f32 to vector<8x512xf32>
    %21 = arith.mulf %20, %19 : vector<8x512xf32>
    %22 = arith.addf %16, %21 : vector<8x512xf32>
    %23 = vector.extract_strided_slice %14 {offsets = [0, 508], sizes = [8, 4], strides = [1, 1]} : vector<8x512xf32> to vector<8x4xf32>
    %24 = vector.extract_strided_slice %14 {offsets = [0, 0], sizes = [8, 508], strides = [1, 1]} : vector<8x512xf32> to vector<8x508xf32>
    %25 = tpu.concatenate %23, %24 in 1 : vector<8x4xf32>, vector<8x508xf32> -> vector<8x512xf32>
    %cst_5 = arith.constant 0.274068624 : f32
    %26 = vector.broadcast %cst_5 : f32 to vector<8x512xf32>
    %27 = arith.mulf %26, %25 : vector<8x512xf32>
    %28 = arith.addf %22, %27 : vector<8x512xf32>
    %29 = vector.extract_strided_slice %28 {offsets = [0, 8], sizes = [8, 504], strides = [1, 1]} : vector<8x512xf32> to vector<8x504xf32>
    %30 = vector.extract_strided_slice %28 {offsets = [0, 0], sizes = [8, 8], strides = [1, 1]} : vector<8x512xf32> to vector<8x8xf32>
    %31 = tpu.concatenate %29, %30 in 1 : vector<8x504xf32>, vector<8x8xf32> -> vector<8x512xf32>
    %32 = vector.extract_strided_slice %28 {offsets = [0, 4], sizes = [8, 508], strides = [1, 1]} : vector<8x512xf32> to vector<8x508xf32>
    %33 = vector.extract_strided_slice %28 {offsets = [0, 0], sizes = [8, 4], strides = [1, 1]} : vector<8x512xf32> to vector<8x4xf32>
    %34 = tpu.concatenate %32, %33 in 1 : vector<8x508xf32>, vector<8x4xf32> -> vector<8x512xf32>
    %35 = tpu.iota {dimensions = array<i32: 1>} : vector<8x512xi32>
    %c32_i32 = arith.constant 32 : i32
    %c0_i32 = arith.constant 0 : i32
    %36 = arith.cmpi eq, %c32_i32, %c0_i32 : i32
    %c1_i32 = arith.constant 1 : i32
    %37 = arith.select %36, %c1_i32, %c32_i32 : i32
    %38 = vector.broadcast %37 : i32 to vector<8x512xi32>
    %39 = arith.remsi %35, %38 : vector<8x512xi32>
    %c0_i32_6 = arith.constant 0 : i32
    %40 = vector.broadcast %c0_i32_6 : i32 to vector<8x512xi32>
    %41 = arith.cmpi ne, %39, %40 : vector<8x512xi32>
    %c0_i32_7 = arith.constant 0 : i32
    %42 = vector.broadcast %c0_i32_7 : i32 to vector<8x512xi32>
    %43 = arith.cmpi slt, %39, %42 : vector<8x512xi32>
    %c0_i32_8 = arith.constant 0 : i32
    %44 = arith.cmpi slt, %37, %c0_i32_8 : i32
    %45 = vector.broadcast %44 : i1 to vector<8x512xi1>
    %46 = vector.broadcast %45 : vector<8x512xi1> to vector<8x512xi1>
    %47 = arith.xori %43, %46 : vector<8x512xi1>
    %48 = arith.andi %47, %41 : vector<8x512xi1>
    %49 = vector.broadcast %37 : i32 to vector<8x512xi32>
    %50 = arith.addi %39, %49 : vector<8x512xi32>
    %51 = arith.select %48, %50, %39 : vector<8x512xi1>, vector<8x512xi32>
    %c2_i32 = arith.constant 2 : i32
    %52 = vector.broadcast %c2_i32 : i32 to vector<8x512xi32>
    %53 = arith.cmpi slt, %51, %52 : vector<8x512xi32>
    %c4_i32 = arith.constant 4 : i32
    %54 = vector.broadcast %c4_i32 : i32 to vector<8x512xi32>
    %55 = arith.cmpi slt, %51, %54 : vector<8x512xi32>
    %56 = arith.select %55, %34, %28 : vector<8x512xi1>, vector<8x512xf32>
    %57 = arith.select %53, %31, %56 : vector<8x512xi1>, vector<8x512xf32>
    %c0_9 = arith.constant 0 : index
    %c0_10 = arith.constant 0 : index
    %58 = vector.load %arg2[%c0_9, %c0_10] : memref<8x512xf32, #tpu.memory_space<vmem>>, vector<8x512xf32>
    tpu.vector_store %arg2[%c0_9, %c0_10], %57 {strides = array<i32>} : memref<8x512xf32, #tpu.memory_space<vmem>>, vector<8x512xf32>,
    %59 = vector.extract_strided_slice %57 {offsets = [0, 128], sizes = [8, 32], strides = [1, 1]} : vector<8x512xf32> to vector<8x32xf32>
    %60 = vector.extract_strided_slice %57 {offsets = [0, 96], sizes = [8, 32], strides = [1, 1]} : vector<8x512xf32> to vector<8x32xf32>
    %61 = tpu.concatenate %59, %60 in 1 : vector<8x32xf32>, vector<8x32xf32> -> vector<8x64xf32>
    %c0_11 = arith.constant 0 : index
    %c0_12 = arith.constant 0 : index
    %62 = vector.load %arg2[%c0_11, %c0_12] : memref<8x512xf32, #tpu.memory_space<vmem>>, vector<8x64xf32>
    tpu.vector_store %arg2[%c0_11, %c0_12], %61 {strides = array<i32>} : memref<8x512xf32, #tpu.memory_space<vmem>>, vector<8x64xf32>,
    return
  }
  func.func @transform_0(%arg0: i32) -> (i32, i32) {
    %c0_i32 = arith.constant 0 : i32
    %c0_i32_0 = arith.constant 0 : i32
    return %arg0, %c0_i32 : i32, i32
  }
  func.func @transform_1(%arg0: i32) -> (i32, i32) {
    %c0_i32 = arith.constant 0 : i32
    %c0_i32_0 = arith.constant 0 : i32
    return %arg0, %c0_i32 : i32, i32
  }
}

</mosaic_0001>

<bundles_post_ra>
// kernel: tpu_custom_call.1
= control target key start
LH: loop header
LB: loop body
LE: loop exit
PB: predicated region body
PF: predicated region fallthrough
CT: control target
= control target key end

     0   :  { %6 = vsyncpa [#allocation3], 0  ;;  %s408_s0 = inlined_call_operand.hbm [shape: f32[8,512], index: 0, kind: input, shape index: {}]   ;;  %s409_s1 = inlined_call_operand.hbm [shape: f32[8,512], index: 1, kind: output, shape index: {}]  }
   0x1   :  { %7 = vsyncpa [#allocation4], 0  ;;  %s335_s6 = smov [#allocation2]   ;;  %s287_s10 = scalar_lea.hbm %s408_s0, 512 }
   0x2   :  { %s14_s7 = sshll.u32 %s335_s6, 4  ;;  %p288_p0 = scmp.ne.s32.totalorder %s408_s0, %s287_s10  ;;  %s15_s7 = int_to_ptr.vmem [resolvable:$true] %s14_s7 }
   0x3   :  { %p291_p1 = scmp.lt.u32.totalorder %s287_s10, %s408_s0 }
   0x5   :  { %p293_p2 = pnand %p291_p1, %p288_p0 }
   0x7   :  { %296 = shalt.err (!%p293_p2)
}
   0x8   :  { %s297_s15 = scalar_lea.vmem %s15_s7, 512  ;;  %p302_p4 = scmp.lt.s32.totalorder %s15_s7, %s15_s7 }
   0x9   :  { %p298_p3 = scmp.ne.s32.totalorder %s15_s7, %s297_s15  ;;  %p303_p5 = scmp.lt.s32.totalorder %s297_s15, %s297_s15 }
   0xb   :  { %p304_p6 = por %p303_p5, %p302_p4 }
   0xd   :  { %p305_p7 = pnand %p304_p6, %p298_p3 }
   0xf   :  { %308 = shalt.err (!%p305_p7)
}
  0x10   :  { %17 = dma.hbm_to_vmem [thread:$0]  %s408_s0, 512, %s15_s7, [#allocation3]  }
  0x11   :  { %331 = dma.done.wait [#allocation3], 512  }
  0x12   :  { %332 = vsyncadd [#allocation3], 4294966784  ;;  %v24_v0 = vld [vmem:[#allocation2 + $0x18] sm:$0xff]  ;;  %v22_v1 = vld [vmem:[#allocation2 + $0x8] sm:$0xff]  ;;  %s336_s18 = smov 32   ;;  %s337_s19 = smov 64  }
  0x13   :  { %30 = vrot.lane.b32.xlu0 %v24_v0, %s336_s18  ;;  %38 = vrot.lane.b32.xlu1 %v22_v1, %s336_s18  ;;  %v23_v2 = vld [vmem:[#allocation2 + $0x10] sm:$0xff]  ;;  %v21_v3 = vld [vmem:[#allocation2] sm:$0xff]  ;;  %vm42_vm0 = vcmask 261120   ;;  %vm68_vm1 = vcmask 523264   ;;  %v28_v15 = vmul.f32 0.27406862, %v24_v0 }
  0x14   :  { %v25_v9 = vmul.f32 0.27406862, %v21_v3  ;;  %v26_v25 = vmul.f32 0.27406862, %v22_v1  ;;  %s338_s0 = smov 2   ;;  %s339_s20 = smov 4  }
  0x15   :  { %v27_v33 = vmul.f32 0.27406862, %v23_v2  ;;  %vm102_vm2 = vcmask 15360   ;;  %vm128_vm3 = vcmask 31744   ;;  %s340_s21 = smov 124   ;;  %s341_s22 = smov 120  }
  0x16   :  { %vm175_vm4 = vcmask 1014784   ;;  %vm157_vm5 = vcmask 982016   ;;  %s342_s23 = smov [#allocation5]  }
  0x17   :  { %40 = vrot.lane.b32.xlu1 %v23_v2, %s336_s18  ;;  %36 = vrot.lane.b32.xlu0 %v21_v3, %s336_s18  ;;  %s270_s24 = sshll.u32 %s342_s23, 4  ;;  %s271_s24 = int_to_ptr.vmem [resolvable:$true] %s270_s24 }
  0x18   :  { %s309_s25 = scalar_lea.vmem %s271_s24, 512  ;;  %p314_p9 = scmp.lt.s32.totalorder %s271_s24, %s271_s24 }
  0x19   :  { %p310_p8 = scmp.ne.s32.totalorder %s271_s24, %s309_s25  ;;  %p315_p10 = scmp.lt.s32.totalorder %s309_s25, %s309_s25 }
  0x1b   :  { %62 = vrot.lane.b32.xlu1 %v21_v3, %s337_s19  ;;  %59 = vrot.lane.b32.xlu0 %v24_v0, %s337_s19  ;;  %p316_p11 = por %p315_p10, %p314_p9 }
  0x1d   :  { %p317_p12 = pnand %p316_p11, %p310_p8 }
  0x1f   :  { %66 = vrot.lane.b32.xlu1 %v23_v2, %s337_s19  ;;  %64 = vrot.lane.b32.xlu0 %v22_v1, %s337_s19 }
  0x85   :  { %v31_v4 = vpop.permute.xlu0 %30  ;;  %v39_v5 = vpop.permute.xlu1 %38 }
  0x89   :  { %v41_v6 = vpop.permute.xlu1 %40  ;;  %v37_v7 = vpop.permute.xlu0 %36 }
  0x8a   :  { %v50_v8 = vsel %vm42_vm0, %v31_v4, %v37_v7  ;;  %v45_v11 = vsel %vm42_vm0, %v41_v6, %v31_v4  ;;  %v43_v19 = vsel %vm42_vm0, %v37_v7, %v39_v5  ;;  %v44_v29 = vsel %vm42_vm0, %v39_v5, %v41_v6 }
  0x8b   :  { %v51_v10 = vmul.f32 0.45186275, %v50_v8  ;;  %v54_v16 = vmul.f32 0.45186275, %v45_v11  ;;  %v52_v27 = vmul.f32 0.45186275, %v43_v19 }
  0x8c   :  { %v53_v34 = vmul.f32 0.45186275, %v44_v29 }
  0x8d   :  { %v63_v12 = vpop.permute.xlu1 %62  ;;  %v60_v13 = vpop.permute.xlu0 %59  ;;  %v55_v17 = vadd.f32 %v51_v10, %v25_v9  ;;  %v58_v26 = vadd.f32 %v54_v16, %v28_v15  ;;  %v56_v35 = vadd.f32 %v52_v27, %v26_v25 }
  0x8e   :  { %v76_v14 = vsel %vm68_vm1, %v60_v13, %v63_v12  ;;  %v57_v38 = vadd.f32 %v53_v34, %v27_v33 }
  0x8f   :  { %v77_v18 = vmul.f32 0.27406862, %v76_v14 }
  0x91   :  { %v67_v20 = vpop.permute.xlu1 %66  ;;  %v65_v21 = vpop.permute.xlu0 %64  ;;  %v81_v22 = vadd.f32 %v77_v18, %v55_v17 }
  0x92   :  { %v71_v23 = vsel %vm68_vm1, %v67_v20, %v60_v13  ;;  %v69_v24 = vsel %vm68_vm1, %v63_v12, %v65_v21  ;;  %v70_v32 = vsel %vm68_vm1, %v65_v21, %v67_v20  ;;  %v185_v12 = vlaneseq }
  0x93   :  { %v80_v28 = vmul.f32 0.27406862, %v71_v23  ;;  %96 = vrot.lane.b32.xlu1 %v81_v22, %s338_s0  ;;  %v78_v30 = vmul.f32 0.27406862, %v69_v24  ;;  %v79_v36 = vmul.f32 0.27406862, %v70_v32 }
  0x94   :  { %v85_v49 = vmul.f32 0.27406862, %v81_v22  ;;  %v186_v13 = vand.u32 127, %v185_v12 }
  0x95   :  { %v84_v31 = vadd.f32 %v80_v28, %v58_v26  ;;  %v82_v37 = vadd.f32 %v78_v30, %v56_v35  ;;  %v83_v39 = vadd.f32 %v79_v36, %v57_v38 }
  0x96   :  { %v194_v14 = vand.u32 31, %v186_v13  ;;  %v187_v15 = vadd.s32 128, %v186_v13  ;;  %v188_v20 = vadd.s32 256, %v186_v13  ;;  %v189_v21 = vadd.s32 384, %v186_v13 }
  0x97   :  { %90 = vrot.lane.b32.xlu0 %v84_v31, %s338_s0  ;;  %119 = vrot.lane.b32.xlu1 %v84_v31, %s339_s20  ;;  %v86_v50 = vmul.f32 0.27406862, %v82_v37  ;;  %v87_v0 = vmul.f32 0.27406862, %v83_v39  ;;  %v88_v6 = vmul.f32 0.27406862, %v84_v31 }
  0x98   :  { %vm242_vm6 = vcmp.lt.s32.totalorder %v194_v14, 4  ;;  %vm238_vm7 = vcmp.lt.s32.totalorder %v194_v14, 2  ;;  %v201_v19 = vand.u32 31, %v187_v15  ;;  %v208_v27 = vand.u32 31, %v188_v20 }
  0x99   :  { %v215_v28 = vand.u32 31, %v189_v21 }
  0x9a   :  { %vm243_vm8 = vcmp.lt.s32.totalorder %v201_v19, 4  ;;  %vm239_vm9 = vcmp.lt.s32.totalorder %v201_v19, 2  ;;  %vm244_vm10 = vcmp.lt.s32.totalorder %v208_v27, 4  ;;  %vm240_vm12 = vcmp.lt.s32.totalorder %v208_v27, 2 }
  0x9b   :  { %98 = vrot.lane.b32.xlu0 %v82_v37, %s338_s0  ;;  %124 = vrot.lane.b32.xlu1 %v82_v37, %s339_s20  ;;  %vm245_vm11 = vcmp.lt.s32.totalorder %v215_v28, 4  ;;  %vm241_vm13 = vcmp.lt.s32.totalorder %v215_v28, 2 }
  0x9f   :  { %122 = vrot.lane.b32.xlu0 %v81_v22, %s339_s20  ;;  %126 = vrot.lane.b32.xlu1 %v83_v39, %s339_s20 }
  0xa3   :  { %100 = vrot.lane.b32.xlu0 %v83_v39, %s338_s0 }
 0x105   :  { %v97_v40 = vpop.permute.xlu1 %96 }
 0x109   :  { %v91_v41 = vpop.permute.xlu0 %90  ;;  %v120_v42 = vpop.permute.xlu1 %119 }
 0x10a   :  { %v110_v43 = vsel %vm102_vm2, %v91_v41, %v97_v40 }
 0x10b   :  { %v111_v46 = vmul.f32 0.45186275, %v110_v43 }
 0x10d   :  { %v99_v44 = vpop.permute.xlu0 %98  ;;  %v125_v48 = vpop.permute.xlu1 %124  ;;  %v115_v54 = vadd.f32 %v111_v46, %v85_v49 }
 0x10e   :  { %v103_v45 = vsel %vm102_vm2, %v97_v40, %v99_v44 }
 0x10f   :  { %v112_v47 = vmul.f32 0.45186275, %v103_v45 }
 0x111   :  { %v123_v51 = vpop.permute.xlu0 %122  ;;  %v116_v55 = vadd.f32 %v112_v47, %v86_v50  ;;  %v127_v58 = vpop.permute.xlu1 %126 }
 0x112   :  { %v129_v52 = vsel %vm128_vm3, %v123_v51, %v125_v48  ;;  %v136_v53 = vsel %vm128_vm3, %v120_v42, %v123_v51  ;;  %v130_v2 = vsel %vm128_vm3, %v125_v48, %v127_v58  ;;  %v131_v7 = vsel %vm128_vm3, %v127_v58, %v120_v42 }
 0x113   :  { %v137_v56 = vmul.f32 0.27406862, %v136_v53  ;;  %v138_v57 = vmul.f32 0.27406862, %v129_v52  ;;  %v139_v5 = vmul.f32 0.27406862, %v130_v2 }
 0x114   :  { %v140_v10 = vmul.f32 0.27406862, %v131_v7 }
 0x115   :  { %v101_v59 = vpop.permute.xlu0 %100  ;;  %v142_v60 = vadd.f32 %v138_v57, %v116_v55  ;;  %v141_v61 = vadd.f32 %v137_v56, %v115_v54 }
 0x116   :  { %v104_v62 = vsel %vm102_vm2, %v99_v44, %v101_v59  ;;  %v105_v63 = vsel %vm102_vm2, %v101_v59, %v91_v41 }
 0x117   :  { %v113_v1 = vmul.f32 0.45186275, %v104_v62  ;;  %169 = vrot.lane.b32.xlu1 %v142_v60, %s340_s21  ;;  %167 = vrot.lane.b32.xlu0 %v141_v61, %s340_s21  ;;  %v114_v3 = vmul.f32 0.45186275, %v105_v63 }
 0x119   :  { %v117_v4 = vadd.f32 %v113_v1, %v87_v0  ;;  %v118_v8 = vadd.f32 %v114_v3, %v88_v6 }
 0x11b   :  { %151 = vrot.lane.b32.xlu1 %v142_v60, %s341_s22  ;;  %149 = vrot.lane.b32.xlu0 %v141_v61, %s341_s22  ;;  %v143_v9 = vadd.f32 %v139_v5, %v117_v4  ;;  %v144_v11 = vadd.f32 %v140_v10, %v118_v8 }
 0x11f   :  { %153 = vrot.lane.b32.xlu1 %v143_v9, %s341_s22  ;;  %171 = vrot.lane.b32.xlu0 %v143_v9, %s340_s21 }
 0x123   :  { %155 = vrot.lane.b32.xlu1 %v144_v11, %s341_s22  ;;  %173 = vrot.lane.b32.xlu0 %v144_v11, %s340_s21 }
 0x189   :  { %v170_v16 = vpop.permute.xlu1 %169  ;;  %v168_v17 = vpop.permute.xlu0 %167 }
 0x18a   :  { %v176_v18 = vsel %vm175_vm4, %v168_v17, %v170_v16 }
 0x18b   :  { %v246_v25 = vsel %vm242_vm6, %v176_v18, %v141_v61 }
 0x18d   :  { %v152_v22 = vpop.permute.xlu1 %151  ;;  %v150_v23 = vpop.permute.xlu0 %149 }
 0x18e   :  { %v158_v24 = vsel %vm157_vm5, %v150_v23, %v152_v22 }
 0x18f   :  { %v250_v26 = vsel %vm238_vm7, %v158_v24, %v246_v25 }
 0x190   :  { %259 = vrot.lane.b32.xlu0 %v250_v26, %s337_s19  ;;  %254 = vst [vmem:[#allocation5] sm:$0xff] %v250_v26 }
 0x191   :  { %v154_v29 = vpop.permute.xlu1 %153  ;;  %v172_v30 = vpop.permute.xlu0 %171 }
 0x192   :  { %v159_v31 = vsel %vm157_vm5, %v152_v22, %v154_v29  ;;  %v177_v32 = vsel %vm175_vm4, %v170_v16, %v172_v30 }
 0x193   :  { %v247_v33 = vsel %vm243_vm8, %v177_v32, %v142_v60 }
 0x194   :  { %v251_v34 = vsel %vm239_vm9, %v159_v31, %v247_v33 }
 0x195   :  { %v156_v35 = vpop.permute.xlu1 %155  ;;  %v174_v36 = vpop.permute.xlu0 %173  ;;  %255 = vst [vmem:[#allocation5 + $0x8] sm:$0xff] %v251_v34 }
 0x196   :  { %v160_v37 = vsel %vm157_vm5, %v154_v29, %v156_v35  ;;  %v166_v38 = vsel %vm157_vm5, %v156_v35, %v150_v23  ;;  %v178_v39 = vsel %vm175_vm4, %v172_v30, %v174_v36  ;;  %v184_v40 = vsel %vm175_vm4, %v174_v36, %v168_v17 }
 0x197   :  { %v248_v41 = vsel %vm244_vm10, %v178_v39, %v143_v9  ;;  %v249_v42 = vsel %vm245_vm11, %v184_v40, %v144_v11 }
 0x198   :  { %v252_v43 = vsel %vm240_vm12, %v160_v37, %v248_v41  ;;  %v253_v44 = vsel %vm241_vm13, %v166_v38, %v249_v42 }
 0x199   :  { %256 = vst [vmem:[#allocation5 + $0x10] sm:$0xff] %v252_v43  ;;  %257 = vst [vmem:[#allocation5 + $0x18] sm:$0xff] %v253_v44 }
 0x202   :  { %v260_v45 = vpop.permute.xlu0 %259 }
 0x203   :  { %v262_v46 = vsel %vm42_vm0, %v251_v34, %v260_v45 }
 0x204   :  { %263 = vst.msk [vmem:[#allocation5] sm:$0xff] %vm68_vm1, %v262_v46 }
 0x205   :  { %320 = shalt.err (!%p317_p12)
}
 0x206   :  { %s321_s28 = scalar_lea.hbm %s409_s1, 512 }
 0x207   :  { %p322_p13 = scmp.ne.s32.totalorder %s409_s1, %s321_s28  ;;  %p325_p0 = scmp.lt.u32.totalorder %s321_s28, %s409_s1 }
 0x209   :  { %p327_p1 = pnand %p325_p0, %p322_p13 }
 0x20b   :  { %330 = shalt.err (!%p327_p1)
}
 0x20c   :  { %273 = dma.vmem_to_hbm [thread:$0]  %s271_s24, 512, %s409_s1, [#allocation4]  }
 0x20d   :  { %333 = dma.done.wait [#allocation4], 512  }
 0x20e   :  { %334 = vsyncadd [#allocation4], 4294966784 }
 0x20f   :  { %277 = vsyncpa [#allocation3], 1 }
 0x210   :  { %278 = vsyncpa [#allocation4], 1 }

</bundles_post_ra>
